<compile_context>
chip_gen: v5e
topology: v5e:2x2
jax: 0.10.0
libtpu: 0.0.40
codegen_flags: <defaults>
</compile_context>

<pallas_src>
import functools

import jax
import jax.numpy as jnp
from jax.experimental import pallas as pl
from jax.experimental.pallas import tpu as pltpu

_LANES = 128
_SUBLANES = 8


def _round_up(x, m):
    return ((x + m - 1) // m) * m


# ----------------------------------------------------------------------------
# Fused kernel: (Linear + folded-BN + LeakyReLU) x 4  ->  Linear head
# ----------------------------------------------------------------------------
def _emoca_fused_kernel(x_ref,
                        w1_ref, s1_ref, w2_ref, s2_ref,
                        w3_ref, s3_ref, w4_ref, s4_ref,
                        wo_ref, so_ref,
                        o_ref, *, negative_slope):
    # x_ref : (tm, Kp)    input batch tile (K zero-padded to lane multiple)
    # wN_ref: (in, out)   BN-folded weight (bf16), VMEM-resident, single buffer
    # sN_ref: (1,  out)   folded shift (f32) = b*scale + beta - mean*scale
    # wo/so : lane-padded output head (out padded to a multiple of 128)
    # o_ref : (tm, Np)    output tile
    h = x_ref[...].astype(jnp.float32)
    for w_ref, s_ref in ((w1_ref, s1_ref), (w2_ref, s2_ref),
                         (w3_ref, s3_ref), (w4_ref, s4_ref)):
        z = jnp.dot(h.astype(w_ref.dtype), w_ref[...],
                    preferred_element_type=jnp.float32) + s_ref[...]
        h = jnp.maximum(z, negative_slope * z)            # LeakyReLU(0.2), f32
    z = jnp.dot(h.astype(wo_ref.dtype), wo_ref[...],
                preferred_element_type=jnp.float32) + so_ref[...]
    o_ref[...] = z.astype(o_ref.dtype)


# ----------------------------------------------------------------------------
# Spec / VMEM helpers
# ----------------------------------------------------------------------------
def _const_spec(shape):
    """Constant-index BlockSpec; single VMEM buffer if pipeline_mode exists.

    Returns (spec, single_buffered_flag)."""
    idx_map = lambda i: (0,) * len(shape)
    buffered = getattr(pl, "Buffered", None)
    if buffered is not None:
        try:
            return pl.BlockSpec(shape, idx_map,
                                pipeline_mode=buffered(1)), True
        except TypeError:
            pass
    return pl.BlockSpec(shape, idx_map), False


def _physical_vmem_bytes():
    """Generation-aware physical VMEM size with a conservative fallback."""
    try:
        info = pltpu.get_tpu_info()
        for attr in ("vmem_capacity_bytes", "vmem_size_bytes", "vmem_bytes"):
            v = getattr(info, attr, None)
            if v:
                return int(v)
    except Exception:
        pass
    return 64 * 1024 * 1024        # v7x-safe lower bound


# ----------------------------------------------------------------------------
# Wrapper (pallas_call plumbing)
# ----------------------------------------------------------------------------
def emoca_fer_forward(params, x, *, negative_slope=0.2, max_tm=256):
    """Full EmocaFER forward in one fused Pallas call. x: (B, input_size)."""
    M, K = x.shape
    w1, w2, w3, w4 = (params[f"fc{i}"]["w"] for i in range(1, 5))
    s1, s2, s3, s4 = (params[f"fc{i}"]["shift"].reshape(1, -1).astype(jnp.float32)
                      for i in range(1, 5))
    wo = params["output"]["w"]
    so = params["output"]["shift"].astype(jnp.float32)
    H = w1.shape[1]
    N_out = wo.shape[1]
    w_dtype = w1.dtype

    # Lane-dense contraction dim for layer 1: pad K -> multiple of 128 (zeros
    # in both x and W1, so the extra MACs contribute exactly 0).
    Kp = _round_up(K, _LANES)
    if Kp != K:
        w1p = jnp.zeros((Kp, H), w_dtype).at[:K, :].set(w1)
    else:
        w1p = w1

    # Lane-dense output head: pad N_out -> multiple of 128 for unmasked vst.
    Np = _round_up(N_out, _LANES)
    if Np != N_out:
        wo_p = jnp.zeros((H, Np), w_dtype).at[:, :N_out].set(wo)
        so_p = jnp.zeros((1, Np), jnp.float32).at[0, :N_out].set(so)
    else:
        wo_p = wo
        so_p = so.reshape(1, Np)

    # Batch tiling: multiple of 8 sublanes, capped at max_tm; pad ragged batch.
    tm = min(_round_up(max(M, 1), _SUBLANES), max_tm)
    Mp = _round_up(M, tm)
    if Mp != M or Kp != K:
        xp = jnp.zeros((Mp, Kp), x.dtype).at[:M, :K].set(x)
    else:
        xp = x
    grid = (Mp // tm,)

    # Constant-index specs (single-buffered when supported).
    spec_w1, single = _const_spec((Kp, H))
    spec_s1, _ = _const_spec((1, H))
    spec_w2, _ = _const_spec((H, H))
    spec_s2, _ = _const_spec((1, H))
    spec_w3, _ = _const_spec((H, H))
    spec_s3, _ = _const_spec((1, H))
    spec_w4, _ = _const_spec((H, H))
    spec_s4, _ = _const_spec((1, H))
    spec_wo, _ = _const_spec((H, Np))
    spec_so, _ = _const_spec((1, Np))

    # VMEM budget: single-buffered constants (x2 if Buffered(1) unavailable),
    # double-buffered I/O tiles, f32 activation intermediates, small headroom.
    w_itemsize = jnp.dtype(w_dtype).itemsize
    const_bytes = w_itemsize * (w1p.size + w2.size + w3.size + w4.size + wo_p.size)
    const_bytes += 4 * (s1.size + s2.size + s3.size + s4.size + so_p.size)
    if not single:
        const_bytes *= 2
    io_bytes = 2 * 4 * tm * (Kp + Np)          # double-buffered x / out tiles
    act_bytes = 3 * 4 * tm * H                 # f32 h / z intermediates
    vmem_needed = const_bytes + io_bytes + act_bytes + (4 << 20)

    phys_vmem = _physical_vmem_bytes()
    vmem_cap = phys_vmem - (12 << 20)          # headroom for Mosaic scratch
    vmem_limit_bytes = int(min(vmem_cap, max(32 << 20, vmem_needed)))

    out = pl.pallas_call(
        functools.partial(_emoca_fused_kernel, negative_slope=negative_slope),
        out_shape=jax.ShapeDtypeStruct((Mp, Np), x.dtype),
        grid_spec=pltpu.PrefetchScalarGridSpec(
            num_scalar_prefetch=0,
            grid=grid,
            in_specs=[
                pl.BlockSpec((tm, Kp), lambda i: (i, 0)),  # x batch tile
                spec_w1, spec_s1,                          # layer 1 (resident)
                spec_w2, spec_s2,                          # layer 2
                spec_w3, spec_s3,                          # layer 3
                spec_w4, spec_s4,                          # layer 4
                spec_wo, spec_so,                          # output head
            ],
            out_specs=pl.BlockSpec((tm, Np), lambda i: (i, 0)),
        ),
        compiler_params=pltpu.CompilerParams(
            dimension_semantics=("parallel",),
            vmem_limit_bytes=vmem_limit_bytes),
    )(xp, w1p, s1, w2, s2, w3, s3, w4, s4, wo_p, so_p)

    return out[:M, :N_out]


# ----------------------------------------------------------------------------
# Parameter construction (synthetic, deterministic) with BN/bias folding
# ----------------------------------------------------------------------------
def init_emoca_fer_params(key, input_size, hidden_size, output_size,
                          compute_dtype=jnp.bfloat16, eps=1e-5):
    """Synthetic params matching the module's shapes, with inference-mode
    BatchNorm1d and the linear bias folded into (W', shift')."""
    dims = [(input_size, hidden_size),
            (hidden_size, hidden_size),
            (hidden_size, hidden_size),
            (hidden_size, hidden_size)]
    params = {}
    keys = jax.random.split(key, len(dims) * 6 + 2)
    ki = 0
    for li, (fin, fout) in enumerate(dims, start=1):
        bound = float(1.0 / (fin ** 0.5))
        w = jax.random.uniform(keys[ki], (fin, fout), jnp.float32,
                               -bound, bound); ki += 1
        b = jax.random.uniform(keys[ki], (fout,), jnp.float32,
                               -bound, bound); ki += 1
        gamma = 1.0 + 0.1 * jax.random.normal(keys[ki], (fout,), jnp.float32); ki += 1
        beta = 0.1 * jax.random.normal(keys[ki], (fout,), jnp.float32); ki += 1
        mean = 0.1 * jax.random.normal(keys[ki], (fout,), jnp.float32); ki += 1
        var = jnp.abs(1.0 + 0.1 * jax.random.normal(keys[ki], (fout,),
                                                    jnp.float32)); ki += 1
        # y = ((x@W + b) - mean) * gamma/sqrt(var+eps) + beta
        #   = x @ (W * scale) + (b*scale + beta - mean*scale)
        scale = gamma * jax.lax.rsqrt(var + eps)
        w_fold = (w * scale[None, :]).astype(compute_dtype)
        shift_fold = (b * scale + beta - mean * scale).astype(jnp.float32)
        params[f"fc{li}"] = {"w": w_fold, "shift": shift_fold}

    bound = float(1.0 / (hidden_size ** 0.5))
    w_out = jax.random.uniform(keys[ki], (hidden_size, output_size),
                               jnp.float32, -bound, bound); ki += 1
    b_out = jax.random.uniform(keys[ki], (output_size,), jnp.float32,
                               -bound, bound)
    params["output"] = {"w": w_out.astype(compute_dtype),
                        "shift": b_out.astype(jnp.float32)}
    return params


def emoca_fer_reference(params, x, negative_slope=0.2):
    """Pure-JAX reference mirroring the kernel's bf16-input / f32-acc math."""
    h = x.astype(jnp.float32)
    for li in range(1, 5):
        p = params[f"fc{li}"]
        z = jnp.dot(h.astype(p["w"].dtype), p["w"],
                    preferred_element_type=jnp.float32) + p["shift"]
        h = jnp.maximum(z, negative_slope * z)
    p = params["output"]
    return jnp.dot(h.astype(p["w"].dtype), p["w"],
                   preferred_element_type=jnp.float32) + p["shift"]


# ----------------------------------------------------------------------------
# Main
# ----------------------------------------------------------------------------
if __name__ == "__main__":
    # Small shapes consistent with the module (defaults are 156 -> 2048x4 -> 10).
    batch = 6            # deliberately NOT a multiple of 8: exercises padding path
    input_size = 156
    hidden_size = 256
    output_size = 10

    key = jax.random.PRNGKey(0)
    key_params, key_x = jax.random.split(key)

    params = init_emoca_fer_params(key_params, input_size, hidden_size,
                                   output_size)
    x = jax.random.normal(key_x, (batch, input_size), jnp.float32)

    out = jax.block_until_ready(emoca_fer_forward(params, x))
    ref = jax.block_until_ready(emoca_fer_reference(params, x))

    assert out.shape == (batch, output_size)
    # bf16 matmul inputs on both sides; residual difference is reduction order.
    assert jnp.allclose(out, ref, atol=1e-2, rtol=1e-2), "mismatch vs reference"

    print("KERNEL_OK")
</pallas_src>

<mosaic_0001>
module attributes {stable_mosaic.version = 11 : i64} {
  func.func @_emoca_fused_kernel(%arg0: i32, %arg1: memref<8x256xf32, #tpu.memory_space<vmem>>, %arg2: memref<256x256xbf16, #tpu.memory_space<vmem>>, %arg3: memref<1x256xf32, #tpu.memory_space<vmem>>, %arg4: memref<256x256xbf16, #tpu.memory_space<vmem>>, %arg5: memref<1x256xf32, #tpu.memory_space<vmem>>, %arg6: memref<256x256xbf16, #tpu.memory_space<vmem>>, %arg7: memref<1x256xf32, #tpu.memory_space<vmem>>, %arg8: memref<256x256xbf16, #tpu.memory_space<vmem>>, %arg9: memref<1x256xf32, #tpu.memory_space<vmem>>, %arg10: memref<256x128xbf16, #tpu.memory_space<vmem>>, %arg11: memref<1x128xf32, #tpu.memory_space<vmem>>, %arg12: memref<8x128xf32, #tpu.memory_space<vmem>>) attributes {dimension_semantics = [#tpu.dimension_semantics<parallel>], iteration_bounds = array<i64: 1>, scalar_prefetch = 0 : i64, scratch_operands = 0 : i64, tpu.core_type = #tpu.core_type<tc>, window_params = [{transform_indices = @transform_0, window_bounds = array<i64: 8, 256>}, {pipeline_mode = #tpu.pipeline_mode<synchronous>, transform_indices = @transform_1, window_bounds = array<i64: 256, 256>}, {pipeline_mode = #tpu.pipeline_mode<synchronous>, transform_indices = @transform_2, window_bounds = array<i64: 1, 256>}, {pipeline_mode = #tpu.pipeline_mode<synchronous>, transform_indices = @transform_3, window_bounds = array<i64: 256, 256>}, {pipeline_mode = #tpu.pipeline_mode<synchronous>, transform_indices = @transform_4, window_bounds = array<i64: 1, 256>}, {pipeline_mode = #tpu.pipeline_mode<synchronous>, transform_indices = @transform_5, window_bounds = array<i64: 256, 256>}, {pipeline_mode = #tpu.pipeline_mode<synchronous>, transform_indices = @transform_6, window_bounds = array<i64: 1, 256>}, {pipeline_mode = #tpu.pipeline_mode<synchronous>, transform_indices = @transform_7, window_bounds = array<i64: 256, 256>}, {pipeline_mode = #tpu.pipeline_mode<synchronous>, transform_indices = @transform_8, window_bounds = array<i64: 1, 256>}, {pipeline_mode = #tpu.pipeline_mode<synchronous>, transform_indices = @transform_9, window_bounds = array<i64: 256, 128>}, {pipeline_mode = #tpu.pipeline_mode<synchronous>, transform_indices = @transform_10, window_bounds = array<i64: 1, 128>}, {transform_indices = @transform_11, window_bounds = array<i64: 8, 128>}]} {
    %c0 = arith.constant 0 : index
    %c0_0 = arith.constant 0 : index
    %0 = vector.load %arg1[%c0, %c0_0] : memref<8x256xf32, #tpu.memory_space<vmem>>, vector<8x256xf32>
    %1 = arith.truncf %0 : vector<8x256xf32> to vector<8x256xbf16>
    %c0_1 = arith.constant 0 : index
    %c0_2 = arith.constant 0 : index
    %2 = vector.load %arg2[%c0_1, %c0_2] : memref<256x256xbf16, #tpu.memory_space<vmem>>, vector<256x256xbf16>
    %cst = arith.constant dense<0.000000e+00> : vector<8x256xf32>
    %3 = tpu.matmul %1, %2, %cst {dimension_numbers = #tpu.dot_dimension_numbers<[1], [0], [0], [1], [0, 0, 1, 1], [], []>} : vector<8x256xbf16>, vector<256x256xbf16>, vector<8x256xf32> -> vector<8x256xf32>
    %c0_3 = arith.constant 0 : index
    %c0_4 = arith.constant 0 : index
    %4 = vector.load %arg3[%c0_3, %c0_4] : memref<1x256xf32, #tpu.memory_space<vmem>>, vector<1x256xf32>
    %5 = vector.broadcast %4 : vector<1x256xf32> to vector<8x256xf32>
    %6 = arith.addf %3, %5 : vector<8x256xf32>
    %cst_5 = arith.constant 2.000000e-01 : f32
    %7 = vector.broadcast %cst_5 : f32 to vector<8x256xf32>
    %8 = arith.mulf %7, %6 : vector<8x256xf32>
    %9 = arith.maximumf %6, %8 : vector<8x256xf32>
    %10 = arith.truncf %9 : vector<8x256xf32> to vector<8x256xbf16>
    %c0_6 = arith.constant 0 : index
    %c0_7 = arith.constant 0 : index
    %11 = vector.load %arg4[%c0_6, %c0_7] : memref<256x256xbf16, #tpu.memory_space<vmem>>, vector<256x256xbf16>
    %cst_8 = arith.constant dense<0.000000e+00> : vector<8x256xf32>
    %12 = tpu.matmul %10, %11, %cst_8 {dimension_numbers = #tpu.dot_dimension_numbers<[1], [0], [0], [1], [0, 0, 1, 1], [], []>} : vector<8x256xbf16>, vector<256x256xbf16>, vector<8x256xf32> -> vector<8x256xf32>
    %c0_9 = arith.constant 0 : index
    %c0_10 = arith.constant 0 : index
    %13 = vector.load %arg5[%c0_9, %c0_10] : memref<1x256xf32, #tpu.memory_space<vmem>>, vector<1x256xf32>
    %14 = vector.broadcast %13 : vector<1x256xf32> to vector<8x256xf32>
    %15 = arith.addf %12, %14 : vector<8x256xf32>
    %cst_11 = arith.constant 2.000000e-01 : f32
    %16 = vector.broadcast %cst_11 : f32 to vector<8x256xf32>
    %17 = arith.mulf %16, %15 : vector<8x256xf32>
    %18 = arith.maximumf %15, %17 : vector<8x256xf32>
    %19 = arith.truncf %18 : vector<8x256xf32> to vector<8x256xbf16>
    %c0_12 = arith.constant 0 : index
    %c0_13 = arith.constant 0 : index
    %20 = vector.load %arg6[%c0_12, %c0_13] : memref<256x256xbf16, #tpu.memory_space<vmem>>, vector<256x256xbf16>
    %cst_14 = arith.constant dense<0.000000e+00> : vector<8x256xf32>
    %21 = tpu.matmul %19, %20, %cst_14 {dimension_numbers = #tpu.dot_dimension_numbers<[1], [0], [0], [1], [0, 0, 1, 1], [], []>} : vector<8x256xbf16>, vector<256x256xbf16>, vector<8x256xf32> -> vector<8x256xf32>
    %c0_15 = arith.constant 0 : index
    %c0_16 = arith.constant 0 : index
    %22 = vector.load %arg7[%c0_15, %c0_16] : memref<1x256xf32, #tpu.memory_space<vmem>>, vector<1x256xf32>
    %23 = vector.broadcast %22 : vector<1x256xf32> to vector<8x256xf32>
    %24 = arith.addf %21, %23 : vector<8x256xf32>
    %cst_17 = arith.constant 2.000000e-01 : f32
    %25 = vector.broadcast %cst_17 : f32 to vector<8x256xf32>
    %26 = arith.mulf %25, %24 : vector<8x256xf32>
    %27 = arith.maximumf %24, %26 : vector<8x256xf32>
    %28 = arith.truncf %27 : vector<8x256xf32> to vector<8x256xbf16>
    %c0_18 = arith.constant 0 : index
    %c0_19 = arith.constant 0 : index
    %29 = vector.load %arg8[%c0_18, %c0_19] : memref<256x256xbf16, #tpu.memory_space<vmem>>, vector<256x256xbf16>
    %cst_20 = arith.constant dense<0.000000e+00> : vector<8x256xf32>
    %30 = tpu.matmul %28, %29, %cst_20 {dimension_numbers = #tpu.dot_dimension_numbers<[1], [0], [0], [1], [0, 0, 1, 1], [], []>} : vector<8x256xbf16>, vector<256x256xbf16>, vector<8x256xf32> -> vector<8x256xf32>
    %c0_21 = arith.constant 0 : index
    %c0_22 = arith.constant 0 : index
    %31 = vector.load %arg9[%c0_21, %c0_22] : memref<1x256xf32, #tpu.memory_space<vmem>>, vector<1x256xf32>
    %32 = vector.broadcast %31 : vector<1x256xf32> to vector<8x256xf32>
    %33 = arith.addf %30, %32 : vector<8x256xf32>
    %cst_23 = arith.constant 2.000000e-01 : f32
    %34 = vector.broadcast %cst_23 : f32 to vector<8x256xf32>
    %35 = arith.mulf %34, %33 : vector<8x256xf32>
    %36 = arith.maximumf %33, %35 : vector<8x256xf32>
    %37 = arith.truncf %36 : vector<8x256xf32> to vector<8x256xbf16>
    %c0_24 = arith.constant 0 : index
    %c0_25 = arith.constant 0 : index
    %38 = vector.load %arg10[%c0_24, %c0_25] : memref<256x128xbf16, #tpu.memory_space<vmem>>, vector<256x128xbf16>
    %cst_26 = arith.constant dense<0.000000e+00> : vector<8x128xf32>
    %39 = tpu.matmul %37, %38, %cst_26 {dimension_numbers = #tpu.dot_dimension_numbers<[1], [0], [0], [1], [0, 0, 1, 1], [], []>} : vector<8x256xbf16>, vector<256x128xbf16>, vector<8x128xf32> -> vector<8x128xf32>
    %c0_27 = arith.constant 0 : index
    %c0_28 = arith.constant 0 : index
    %40 = vector.load %arg11[%c0_27, %c0_28] : memref<1x128xf32, #tpu.memory_space<vmem>>, vector<1x128xf32>
    %41 = vector.broadcast %40 : vector<1x128xf32> to vector<8x128xf32>
    %42 = arith.addf %39, %41 : vector<8x128xf32>
    %c0_29 = arith.constant 0 : index
    %c0_30 = arith.constant 0 : index
    %43 = vector.load %arg12[%c0_29, %c0_30] : memref<8x128xf32, #tpu.memory_space<vmem>>, vector<8x128xf32>
    tpu.vector_store %arg12[%c0_29, %c0_30], %42 {strides = array<i32>} : memref<8x128xf32, #tpu.memory_space<vmem>>, vector<8x128xf32>,
    return
  }
  func.func @transform_0(%arg0: i32) -> (i32, i32) {
    %c0_i32 = arith.constant 0 : i32
    %c0_i32_0 = arith.constant 0 : i32
    return %arg0, %c0_i32 : i32, i32
  }
  func.func @transform_1(%arg0: i32) -> (i32, i32) {
    %c0_i32 = arith.constant 0 : i32
    %c0_i32_0 = arith.constant 0 : i32
    %c0_i32_1 = arith.constant 0 : i32
    return %c0_i32, %c0_i32_0 : i32, i32
  }
  func.func @transform_2(%arg0: i32) -> (i32, i32) {
    %c0_i32 = arith.constant 0 : i32
    %c0_i32_0 = arith.constant 0 : i32
    %c0_i32_1 = arith.constant 0 : i32
    return %c0_i32, %c0_i32_0 : i32, i32
  }
  func.func @transform_3(%arg0: i32) -> (i32, i32) {
    %c0_i32 = arith.constant 0 : i32
    %c0_i32_0 = arith.constant 0 : i32
    %c0_i32_1 = arith.constant 0 : i32
    return %c0_i32, %c0_i32_0 : i32, i32
  }
  func.func @transform_4(%arg0: i32) -> (i32, i32) {
    %c0_i32 = arith.constant 0 : i32
    %c0_i32_0 = arith.constant 0 : i32
    %c0_i32_1 = arith.constant 0 : i32
    return %c0_i32, %c0_i32_0 : i32, i32
  }
  func.func @transform_5(%arg0: i32) -> (i32, i32) {
    %c0_i32 = arith.constant 0 : i32
    %c0_i32_0 = arith.constant 0 : i32
    %c0_i32_1 = arith.constant 0 : i32
    return %c0_i32, %c0_i32_0 : i32, i32
  }
  func.func @transform_6(%arg0: i32) -> (i32, i32) {
    %c0_i32 = arith.constant 0 : i32
    %c0_i32_0 = arith.constant 0 : i32
    %c0_i32_1 = arith.constant 0 : i32
    return %c0_i32, %c0_i32_0 : i32, i32
  }
  func.func @transform_7(%arg0: i32) -> (i32, i32) {
    %c0_i32 = arith.constant 0 : i32
    %c0_i32_0 = arith.constant 0 : i32
    %c0_i32_1 = arith.constant 0 : i32
    return %c0_i32, %c0_i32_0 : i32, i32
  }
  func.func @transform_8(%arg0: i32) -> (i32, i32) {
    %c0_i32 = arith.constant 0 : i32
    %c0_i32_0 = arith.constant 0 : i32
    %c0_i32_1 = arith.constant 0 : i32
    return %c0_i32, %c0_i32_0 : i32, i32
  }
  func.func @transform_9(%arg0: i32) -> (i32, i32) {
    %c0_i32 = arith.constant 0 : i32
    %c0_i32_0 = arith.constant 0 : i32
    %c0_i32_1 = arith.constant 0 : i32
    return %c0_i32, %c0_i32_0 : i32, i32
  }
  func.func @transform_10(%arg0: i32) -> (i32, i32) {
    %c0_i32 = arith.constant 0 : i32
    %c0_i32_0 = arith.constant 0 : i32
    %c0_i32_1 = arith.constant 0 : i32
    return %c0_i32, %c0_i32_0 : i32, i32
  }
  func.func @transform_11(%arg0: i32) -> (i32, i32) {
    %c0_i32 = arith.constant 0 : i32
    %c0_i32_0 = arith.constant 0 : i32
    return %arg0, %c0_i32 : i32, i32
  }
}

</mosaic_0001>

<bundles_post_ra>
// kernel: tpu_custom_call.1
= control target key start
LH: loop header
LB: loop body
LE: loop exit
PB: predicated region body
PF: predicated region fallthrough
CT: control target
= control target key end

     0   :  { %16 = vsyncpa [#allocation3], 0  ;;  %s2406_s0 = inlined_call_operand.hbm [shape: f32[8,256], index: 0, kind: input, shape index: {}]   ;;  %s2407_s1 = inlined_call_operand.hbm [shape: bf16[256,256], index: 1, kind: input, shape index: {}]   ;;  %s2408_s2 = inlined_call_operand.hbm [shape: f32[1,256], index: 2, kind: input, shape index: {}]   ;;  %s2409_s3 = inlined_call_operand.hbm [shape: bf16[256,256], index: 3, kind: input, shape index: {}]   ;;  %s2410_s4 = inlined_call_operand.vmem [shape: f32[1,256], index: 4, kind: input, shape index: {}]   ;;  %s2411_s5 = inlined_call_operand.hbm [shape: bf16[256,256], index: 5, kind: input, shape index: {}]   ;;  %s2412_s6 = inlined_call_operand.vmem [shape: f32[1,256], index: 6, kind: input, shape index: {}]   ;;  %s2413_s7 = inlined_call_operand.hbm [shape: bf16[256,256], index: 7, kind: input, shape index: {}]   ;;  %s2414_s8 = inlined_call_operand.vmem [shape: f32[1,256], index: 8, kind: input, shape index: {}]   ;;  %s2415_s9 = inlined_call_operand.hbm [shape: bf16[256,128], index: 9, kind: input, shape index: {}]   ;;  %s2416_s10 = inlined_call_operand.vmem [shape: f32[1,128], index: 10, kind: input, shape index: {}]   ;;  %s2417_s11 = inlined_call_operand.hbm [shape: f32[8,128], index: 11, kind: output, shape index: {}]  }
   0x1   :  { %17 = vsyncpa [#allocation6], 0 }
   0x2   :  { %18 = vsyncpa [#allocation9], 0 }
   0x3   :  { %19 = vsyncpa [#allocation12], 0  ;;  %s36_s19 = sshll.u32 %s2407_s1, 4  ;;  %s37_s19 = int_to_ptr.hbm [resolvable:$true] %s36_s19 }
   0x4   :  { %20 = vsyncpa [#allocation4], 0  ;;  %s2286_s20 = smov [#allocation5]   ;;  %s60_s24 = sshll.u32 %s2409_s3, 4  ;;  %s61_s24 = int_to_ptr.hbm [resolvable:$true] %s60_s24 }
   0x5   :  { %s38_s21 = sshll.u32 %s2286_s20, 4  ;;  %s2287_s25 = smov 128   ;;  %s39_s21 = int_to_ptr.vmem [resolvable:$true] %s38_s21 }
   0x6   :  { %s2288_s26 = smov 8   ;;  %s2289_s27 = smov [#allocation8]  }
   0x7   :  { %44 = dma.hbm_to_vmem [thread:$0]  %s37_s19, 4096, %s39_s21, [#allocation6], %s2287_s25, %s2287_s25, %s2288_s26  }
   0x8   :  { %s62_s28 = sshll.u32 %s2289_s27, 4  ;;  %s90_s30 = sshll.u32 %s2413_s7, 4  ;;  %s63_s28 = int_to_ptr.vmem [resolvable:$true] %s62_s28  ;;  %s91_s30 = int_to_ptr.hbm [resolvable:$true] %s90_s30 }
   0x9   :  { %68 = dma.hbm_to_vmem [thread:$0]  %s61_s24, 4096, %s63_s28, [#allocation9], %s2287_s25, %s2287_s25, %s2288_s26  }
   0xa   :  { %s26_s13 = sshll.u32 %s2406_s0, 4  ;;  %s2290_s14 = smov [#allocation11]   ;;  %s27_s13 = int_to_ptr.hbm [resolvable:$true] %s26_s13 }
   0xb   :  { %s92_s15 = sshll.u32 %s2290_s14, 4  ;;  %s2291_s16 = smov [#allocation2]   ;;  %s93_s15 = int_to_ptr.vmem [resolvable:$true] %s92_s15 }
   0xc   :  { %98 = dma.hbm_to_vmem [thread:$0]  %s91_s30, 4096, %s93_s15, [#allocation12], %s2287_s25, %s2287_s25, %s2288_s26  }
   0xd   :  { %s28_s7 = sshll.u32 %s2291_s16, 4  ;;  %s50_s19 = sshll.u32 %s2408_s2, 4  ;;  %s29_s7 = int_to_ptr.vmem [resolvable:$true] %s28_s7  ;;  %s51_s19 = int_to_ptr.hbm [resolvable:$true] %s50_s19 }
   0xe   :  { %31 = dma.hbm_to_vmem [thread:$0]  %s27_s13, 256, %s29_s7, [#allocation3]  }
   0xf   :  { %s75_s0 = sshll.u32 %s2411_s5, 4  ;;  %s2292_s22 = smov [#allocation7]   ;;  %s76_s0 = int_to_ptr.hbm [resolvable:$true] %s75_s0 }
  0x10   :  { %s52_s23 = sshll.u32 %s2292_s22, 4  ;;  %s2293_s24 = smov [#allocation10]   ;;  %s53_s23 = int_to_ptr.vmem [resolvable:$true] %s52_s23 }
  0x11   :  { %55 = dma.hbm_to_vmem [thread:$0]  %s51_s19, 32, %s53_s23, [#allocation6]  }
  0x12   :  { %s77_s27 = sshll.u32 %s2293_s24, 4  ;;  %s105_s1 = sshll.u32 %s2415_s9, 4  ;;  %s78_s27 = int_to_ptr.vmem [resolvable:$true] %s77_s27  ;;  %s106_s1 = int_to_ptr.hbm [resolvable:$true] %s105_s1 }
  0x13   :  { %83 = dma.hbm_to_vmem [thread:$0]  %s76_s0, 4096, %s78_s27, [#allocation9], %s2287_s25, %s2287_s25, %s2288_s26  }
  0x14   :  { %s2294_s2 = smov [#allocation13]   ;;  %s2295_s5 = smov 64  }
  0x15   :  { %s107_s30 = sshll.u32 %s2294_s2, 4  ;;  %s2296_s3 = smov 4   ;;  %s108_s30 = int_to_ptr.vmem [resolvable:$true] %s107_s30 }
  0x16   :  { %113 = dma.hbm_to_vmem [thread:$0]  %s106_s1, 2048, %s108_s30, [#allocation12], %s2295_s5, %s2295_s5, %s2296_s3  }
  0x17   :  { %2276 = dma.done.wait [#allocation3], 256  }
  0x18   :  { %2277 = vsyncadd [#allocation3], 4294967040 }
  0x19   :  { %2278 = dma.done.wait [#allocation6], 4128  }
  0x1a   :  { %2279 = vsyncadd [#allocation6], 4294963168 }
  0x1b   :  { %2280 = dma.done.wait [#allocation9], 8192  }
  0x1c   :  { %2281 = vsyncadd [#allocation9], 4294959104 }
  0x1d   :  { %2282 = dma.done.wait [#allocation12], 6144  }
  0x1e   :  { %2283 = vsyncadd [#allocation12], 4294961152  ;;  %v1409_v0 = vld [vmem:[#allocation5 + $0x70] sm:$0xf]  ;;  %v1942_v1 = vld [vmem:[#allocation5 + $0x74] sm:$0xf0] }
  0x1f   :  { %v1473_v2 = vld [vmem:[#allocation5 + $0xf0] sm:$0xf]  ;;  %v1410_v3 = vor.u32 %v1942_v1, %v1409_v0  ;;  %v1958_v4 = vld [vmem:[#allocation5 + $0xf4] sm:$0xf0]  ;;  %v1941_v5 = vld [vmem:[#allocation5 + $0x74] sm:$0xf] }
  0x20   :  { %v1411_v6 = vld [vmem:[#allocation5 + $0x78] sm:$0xf0]  ;;  %v1474_v7 = vor.u32 %v1958_v4, %v1473_v2  ;;  %v1957_v9 = vld [vmem:[#allocation5 + $0xf4] sm:$0xf]  ;;  %v1401_v11 = vld [vmem:[#allocation5 + $0x60] sm:$0xf] }
  0x21   :  { %v1414_v8 = vor.u32 %v1941_v5, %v1411_v6  ;;  %v1475_v10 = vld [vmem:[#allocation5 + $0xf8] sm:$0xf0]  ;;  %346 = vmatpush.bf16.msra.mxu0 %v1410_v3  ;;  %v1940_v13 = vld [vmem:[#allocation5 + $0x64] sm:$0xf0]  ;;  %v1465_v14 = vld [vmem:[#allocation5 + $0xe0] sm:$0xf] }
  0x22   :  { %v1478_v12 = vor.u32 %v1957_v9, %v1475_v10  ;;  %v1956_v15 = vld [vmem:[#allocation5 + $0xe4] sm:$0xf0]  ;;  %359 = vmatpush.bf16.msra.mxu1 %v1474_v7  ;;  %v1402_v16 = vor.u32 %v1940_v13, %v1401_v11  ;;  %v1939_v18 = vld [vmem:[#allocation5 + $0x64] sm:$0xf]  ;;  %v1403_v19 = vld [vmem:[#allocation5 + $0x68] sm:$0xf0] }
  0x23   :  { %372 = vmatpush.bf16.msra.mxu2 %v1414_v8  ;;  %v1466_v17 = vor.u32 %v1956_v15, %v1465_v14  ;;  %v1955_v20 = vld [vmem:[#allocation5 + $0xe4] sm:$0xf]  ;;  %v1406_v21 = vor.u32 %v1939_v18, %v1403_v19  ;;  %v1467_v22 = vld [vmem:[#allocation5 + $0xe8] sm:$0xf0]  ;;  %v1393_v23 = vld [vmem:[#allocation5 + $0x50] sm:$0xf] }
  0x24   :  { %385 = vmatpush.bf16.msra.mxu3 %v1478_v12  ;;  %v1938_v24 = vld [vmem:[#allocation5 + $0x54] sm:$0xf0]  ;;  %v1470_v25 = vor.u32 %v1955_v20, %v1467_v22  ;;  %v1457_v26 = vld [vmem:[#allocation5 + $0xd0] sm:$0xf]  ;;  %v1937_v28 = vld [vmem:[#allocation5 + $0x54] sm:$0xf] }
  0x25   :  { %v1954_v27 = vld [vmem:[#allocation5 + $0xd4] sm:$0xf0]  ;;  %347 = vmatpush.bf16.msra.mxu0 %v1402_v16  ;;  %v1394_v29 = vor.u32 %v1938_v24, %v1393_v23  ;;  %v1395_v30 = vld [vmem:[#allocation5 + $0x58] sm:$0xf0]  ;;  %v1953_v31 = vld [vmem:[#allocation5 + $0xd4] sm:$0xf] }
  0x26   :  { %v1459_v32 = vld [vmem:[#allocation5 + $0xd8] sm:$0xf0]  ;;  %360 = vmatpush.bf16.msra.mxu1 %v1466_v17  ;;  %v1458_v33 = vor.u32 %v1954_v27, %v1457_v26  ;;  %v1398_v34 = vor.u32 %v1937_v28, %v1395_v30  ;;  %v1385_v35 = vld [vmem:[#allocation5 + $0x40] sm:$0xf]  ;;  %v1936_v36 = vld [vmem:[#allocation5 + $0x44] sm:$0xf0] }
  0x27   :  { %373 = vmatpush.bf16.msra.mxu2 %v1406_v21  ;;  %v1449_v37 = vld [vmem:[#allocation5 + $0xc0] sm:$0xf]  ;;  %v1462_v38 = vor.u32 %v1953_v31, %v1459_v32  ;;  %v1952_v39 = vld [vmem:[#allocation5 + $0xc4] sm:$0xf0]  ;;  %v1935_v40 = vld [vmem:[#allocation5 + $0x44] sm:$0xf]  ;;  %v1386_v44 = vor.u32 %v1936_v36, %v1385_v35 }
  0x28   :  { %386 = vmatpush.bf16.msra.mxu3 %v1470_v25  ;;  %v1387_v41 = vld [vmem:[#allocation5 + $0x48] sm:$0xf0]  ;;  %v1951_v42 = vld [vmem:[#allocation5 + $0xc4] sm:$0xf]  ;;  %v1450_v45 = vor.u32 %v1952_v39, %v1449_v37  ;;  %v1377_v47 = vld [vmem:[#allocation5 + $0x30] sm:$0xf] }
  0x29   :  { %v1451_v43 = vld [vmem:[#allocation5 + $0xc8] sm:$0xf0]  ;;  %348 = vmatpush.bf16.msra.mxu0 %v1394_v29  ;;  %v1390_v46 = vor.u32 %v1935_v40, %v1387_v41  ;;  %v1934_v48 = vld [vmem:[#allocation5 + $0x34] sm:$0xf0]  ;;  %v1441_v49 = vld [vmem:[#allocation5 + $0xb0] sm:$0xf] }
  0x2a   :  { %361 = vmatpush.bf16.msra.mxu1 %v1458_v33  ;;  %v1454_v50 = vor.u32 %v1951_v42, %v1451_v43  ;;  %v1950_v51 = vld [vmem:[#allocation5 + $0xb4] sm:$0xf0]  ;;  %v1933_v52 = vld [vmem:[#allocation5 + $0x34] sm:$0xf]  ;;  %v1379_v53 = vld [vmem:[#allocation5 + $0x38] sm:$0xf0]  ;;  %v1378_v56 = vor.u32 %v1934_v48, %v1377_v47 }
  0x2b   :  { %374 = vmatpush.bf16.msra.mxu2 %v1398_v34  ;;  %v1949_v54 = vld [vmem:[#allocation5 + $0xb4] sm:$0xf]  ;;  %v1443_v55 = vld [vmem:[#allocation5 + $0xb8] sm:$0xf0]  ;;  %v1442_v57 = vor.u32 %v1950_v51, %v1441_v49  ;;  %v1382_v58 = vor.u32 %v1933_v52, %v1379_v53  ;;  %v1369_v59 = vld [vmem:[#allocation5 + $0x20] sm:$0xf] }
  0x2c   :  { %387 = vmatpush.bf16.msra.mxu3 %v1462_v38  ;;  %v1932_v60 = vld [vmem:[#allocation5 + $0x24] sm:$0xf0]  ;;  %v1433_v61 = vld [vmem:[#allocation5 + $0xa0] sm:$0xf]  ;;  %v1446_v62 = vor.u32 %v1949_v54, %v1443_v55  ;;  %v1931_v0 = vld [vmem:[#allocation5 + $0x24] sm:$0xf] }
  0x2d   :  { %349 = vmatpush.bf16.msra.mxu0 %v1386_v44  ;;  %v1948_v63 = vld [vmem:[#allocation5 + $0xa4] sm:$0xf0]  ;;  %v1371_v1 = vld [vmem:[#allocation5 + $0x28] sm:$0xf0]  ;;  %v1947_v2 = vld [vmem:[#allocation5 + $0xa4] sm:$0xf]  ;;  %v1370_v4 = vor.u32 %v1932_v60, %v1369_v59 }
  0x2e   :  { %362 = vmatpush.bf16.msra.mxu1 %v1450_v45  ;;  %v1435_v3 = vld [vmem:[#allocation5 + $0xa8] sm:$0xf0]  ;;  %v1434_v5 = vor.u32 %v1948_v63, %v1433_v61  ;;  %v1374_v6 = vor.u32 %v1931_v0, %v1371_v1  ;;  %v1361_v7 = vld [vmem:[#allocation5 + $0x10] sm:$0xf]  ;;  %v1930_v8 = vld [vmem:[#allocation5 + $0x14] sm:$0xf0] }
  0x2f   :  { %375 = vmatpush.bf16.msra.mxu2 %v1390_v46  ;;  %v1425_v9 = vld [vmem:[#allocation5 + $0x90] sm:$0xf]  ;;  %v1438_v10 = vor.u32 %v1947_v2, %v1435_v3  ;;  %v1946_v11 = vld [vmem:[#allocation5 + $0x94] sm:$0xf0]  ;;  %v1929_v12 = vld [vmem:[#allocation5 + $0x14] sm:$0xf]  ;;  %v1362_v16 = vor.u32 %v1930_v8, %v1361_v7 }
  0x30   :  { %388 = vmatpush.bf16.msra.mxu3 %v1454_v50  ;;  %v1363_v13 = vld [vmem:[#allocation5 + $0x18] sm:$0xf0]  ;;  %v1945_v14 = vld [vmem:[#allocation5 + $0x94] sm:$0xf]  ;;  %v1353_v17 = vld [vmem:[#allocation5] sm:$0xf]  ;;  %v1426_v18 = vor.u32 %v1946_v11, %v1425_v9 }
  0x31   :  { %350 = vmatpush.bf16.msra.mxu0 %v1378_v56  ;;  %v1427_v15 = vld [vmem:[#allocation5 + $0x98] sm:$0xf0]  ;;  %v1366_v19 = vor.u32 %v1929_v12, %v1363_v13  ;;  %v1928_v20 = vld [vmem:[#allocation5 + $0x4] sm:$0xf0]  ;;  %v1417_v21 = vld [vmem:[#allocation5 + $0x80] sm:$0xf] }
  0x32   :  { %363 = vmatpush.bf16.msra.mxu1 %v1442_v57  ;;  %v1944_v22 = vld [vmem:[#allocation5 + $0x84] sm:$0xf0]  ;;  %v1430_v23 = vor.u32 %v1945_v14, %v1427_v15  ;;  %v1927_v24 = vld [vmem:[#allocation5 + $0x4] sm:$0xf]  ;;  %v1355_v25 = vld [vmem:[#allocation5 + $0x8] sm:$0xf0]  ;;  %v1354_v30 = vor.u32 %v1928_v20, %v1353_v17 }
  0x33   :  { %376 = vmatpush.bf16.msra.mxu2 %v1382_v58  ;;  %v1943_v26 = vld [vmem:[#allocation5 + $0x84] sm:$0xf]  ;;  %v1419_v27 = vld [vmem:[#allocation5 + $0x88] sm:$0xf0]  ;;  %v1537_v28 = vld [vmem:[#allocation8 + $0x70] sm:$0xf]  ;;  %v1418_v34 = vor.u32 %v1944_v22, %v1417_v21  ;;  %v1358_v35 = vor.u32 %v1927_v24, %v1355_v25 }
  0x34   :  { %389 = vmatpush.bf16.msra.mxu3 %v1446_v62  ;;  %v1974_v29 = vld [vmem:[#allocation8 + $0x74] sm:$0xf0]  ;;  %v144_v31 = vld [vmem:[#allocation2] sm:$0xff]  ;;  %v1539_v33 = vld [vmem:[#allocation8 + $0x78] sm:$0xf0]  ;;  %v1422_v37 = vor.u32 %v1943_v26, %v1419_v27  ;;  %s2297_s14 = smov [#allocation14]  }
  0x35   :  { %351 = vmatpush.bf16.msra.mxu0 %v1370_v4  ;;  %v1973_v32 = vld [vmem:[#allocation8 + $0x74] sm:$0xf]  ;;  %v1538_v38 = vor.u32 %v1974_v29, %v1537_v28  ;;  %v1529_v39 = vld [vmem:[#allocation8 + $0x60] sm:$0xf]  ;;  %v1601_v40 = vld [vmem:[#allocation8 + $0xf0] sm:$0xf]  ;;  %v146_v42 = vpack.c.bf16 %v144_v31, %v144_v31 }
  0x36   :  { %364 = vmatpush.bf16.msra.mxu1 %v1434_v5  ;;  %v145_v36 = vld [vmem:[#allocation2 + $0x8] sm:$0xff]  ;;  %v1542_v43 = vor.u32 %v1973_v32, %v1539_v33  ;;  %v1972_v44 = vld [vmem:[#allocation8 + $0x64] sm:$0xf0]  ;;  %v1971_v48 = vld [vmem:[#allocation8 + $0x64] sm:$0xf]  ;;  %s1336_s15 = sshll.u32 %s2297_s14, 4  ;;  %s1337_s15 = int_to_ptr.vmem [resolvable:$true] %s1336_s15 }
  0x37   :  { %377 = vmatpush.bf16.msra.mxu2 %v1374_v6  ;;  %v1990_v41 = vld [vmem:[#allocation8 + $0xf4] sm:$0xf0]  ;;  %v1989_v45 = vld [vmem:[#allocation8 + $0xf4] sm:$0xf]  ;;  %v1603_v46 = vld [vmem:[#allocation8 + $0xf8] sm:$0xf0]  ;;  %v147_v47 = vpack.c.bf16 %v145_v36, %v145_v36  ;;  %v1530_v52 = vor.u32 %v1972_v44, %v1529_v39 }
  0x38   :  { %390 = vmatpush.bf16.msra.mxu3 %v1438_v10  ;;  %v1531_v49 = vld [vmem:[#allocation8 + $0x68] sm:$0xf0]  ;;  %v1602_v50 = vor.u32 %v1990_v41, %v1601_v40  ;;  %v1521_v51 = vld [vmem:[#allocation8 + $0x50] sm:$0xf]  ;;  %v1606_v53 = vor.u32 %v1989_v45, %v1603_v46  ;;  %v1970_v54 = vld [vmem:[#allocation8 + $0x54] sm:$0xf0] }
  0x39   :  { %352 = vmatpush.bf16.msra.mxu0 %v1362_v16  ;;  %v1593_v55 = vld [vmem:[#allocation8 + $0xe0] sm:$0xf]  ;;  %v1988_v56 = vld [vmem:[#allocation8 + $0xe4] sm:$0xf0]  ;;  %v1534_v57 = vor.u32 %v1971_v48, %v1531_v49  ;;  %v1987_v58 = vld [vmem:[#allocation8 + $0xe4] sm:$0xf]  ;;  %v1522_v63 = vor.u32 %v1970_v54, %v1521_v51 }
  0x3a   :  { %365 = vmatpush.bf16.msra.mxu1 %v1426_v18  ;;  %v1595_v59 = vld [vmem:[#allocation8 + $0xe8] sm:$0xf0]  ;;  %v1969_v60 = vld [vmem:[#allocation8 + $0x54] sm:$0xf]  ;;  %v1523_v61 = vld [vmem:[#allocation8 + $0x58] sm:$0xf0]  ;;  %v1594_v62 = vor.u32 %v1988_v56, %v1593_v55 }
  0x3b   :  { %378 = vmatpush.bf16.msra.mxu2 %v1366_v19  ;;  %v1598_v0 = vor.u32 %v1987_v58, %v1595_v59  ;;  %v1513_v1 = vld [vmem:[#allocation8 + $0x40] sm:$0xf]  ;;  %v1585_v2 = vld [vmem:[#allocation8 + $0xd0] sm:$0xf]  ;;  %v1986_v3 = vld [vmem:[#allocation8 + $0xd4] sm:$0xf0]  ;;  %v1526_v4 = vor.u32 %v1969_v60, %v1523_v61 }
  0x3c   :  { %391 = vmatpush.bf16.msra.mxu3 %v1430_v23  ;;  %v1968_v5 = vld [vmem:[#allocation8 + $0x44] sm:$0xf0]  ;;  %v1985_v6 = vld [vmem:[#allocation8 + $0xd4] sm:$0xf]  ;;  %v1587_v7 = vld [vmem:[#allocation8 + $0xd8] sm:$0xf0]  ;;  %v1586_v10 = vor.u32 %v1986_v3, %v1585_v2 }
  0x3d   :  { %353 = vmatpush.bf16.msra.mxu0 %v1354_v30  ;;  %v1967_v8 = vld [vmem:[#allocation8 + $0x44] sm:$0xf]  ;;  %v1515_v9 = vld [vmem:[#allocation8 + $0x48] sm:$0xf0]  ;;  %v1514_v11 = vor.u32 %v1968_v5, %v1513_v1  ;;  %v1590_v12 = vor.u32 %v1985_v6, %v1587_v7  ;;  %v1505_v13 = vld [vmem:[#allocation8 + $0x30] sm:$0xf] }
  0x3e   :  { %366 = vmatpush.bf16.msra.mxu1 %v1418_v34  ;;  %v1577_v14 = vld [vmem:[#allocation8 + $0xc0] sm:$0xf]  ;;  %v1984_v15 = vld [vmem:[#allocation8 + $0xc4] sm:$0xf0]  ;;  %v1518_v16 = vor.u32 %v1967_v8, %v1515_v9  ;;  %v1966_v17 = vld [vmem:[#allocation8 + $0x34] sm:$0xf0] }
  0x3f   :  { %379 = vmatpush.bf16.msra.mxu2 %v1358_v35  ;;  %v1983_v18 = vld [vmem:[#allocation8 + $0xc4] sm:$0xf]  ;;  %v1579_v19 = vld [vmem:[#allocation8 + $0xc8] sm:$0xf0]  ;;  %v1965_v20 = vld [vmem:[#allocation8 + $0x34] sm:$0xf]  ;;  %v1578_v22 = vor.u32 %v1984_v15, %v1577_v14  ;;  %v1506_v23 = vor.u32 %v1966_v17, %v1505_v13 }
  0x40   :  { %392 = vmatpush.bf16.msra.mxu3 %v1422_v37  ;;  %354 = vmatmul.bf16.vlgmr.msra.gmra.mxu0 %v146_v42  ;;  %v1507_v21 = vld [vmem:[#allocation8 + $0x38] sm:$0xf0]  ;;  %v1582_v24 = vor.u32 %v1983_v18, %v1579_v19  ;;  %v1497_v26 = vld [vmem:[#allocation8 + $0x20] sm:$0xf]  ;;  %v1964_v27 = vld [vmem:[#allocation8 + $0x24] sm:$0xf0] }
  0x41   :  { %602 = vmatpush.bf16.msrb.mxu0 %v1538_v38  ;;  %367 = vmatmul.bf16.vlgmr.msra.gmra.mxu1 %v147_v47  ;;  %v1510_v25 = vor.u32 %v1965_v20, %v1507_v21  ;;  %v1963_v28 = vld [vmem:[#allocation8 + $0x24] sm:$0xf]  ;;  %v1498_v29 = vor.u32 %v1964_v27, %v1497_v26  ;;  %v1499_v30 = vld [vmem:[#allocation8 + $0x28] sm:$0xf0]  ;;  %v1569_v32 = vld [vmem:[#allocation8 + $0xb0] sm:$0xf] }
  0x42   :  { %380 = vmatmul.bf16.vlgmr.msra.gmra.mxu2 %v146_v42  ;;  %615 = vmatpush.bf16.msrb.mxu1 %v1602_v50  ;;  %v1502_v31 = vor.u32 %v1963_v28, %v1499_v30  ;;  %v1982_v33 = vld [vmem:[#allocation8 + $0xb4] sm:$0xf0]  ;;  %v1981_v34 = vld [vmem:[#allocation8 + $0xb4] sm:$0xf]  ;;  %v1571_v36 = vld [vmem:[#allocation8 + $0xb8] sm:$0xf0] }
  0x43   :  { %628 = vmatpush.bf16.msrb.mxu2 %v1542_v43  ;;  %393 = vmatmul.bf16.vlgmr.msra.gmra.mxu3 %v147_v47  ;;  %v1570_v35 = vor.u32 %v1982_v33, %v1569_v32  ;;  %v1574_v37 = vor.u32 %v1981_v34, %v1571_v36  ;;  %v1489_v38 = vld [vmem:[#allocation8 + $0x10] sm:$0xf]  ;;  %v1962_v39 = vld [vmem:[#allocation8 + $0x14] sm:$0xf0]  ;;  %v1961_v40 = vld [vmem:[#allocation8 + $0x14] sm:$0xf] }
  0x44   :  { %641 = vmatpush.bf16.msrb.mxu3 %v1606_v53  ;;  %v1490_v41 = vor.u32 %v1962_v39, %v1489_v38  ;;  %v1491_v42 = vld [vmem:[#allocation8 + $0x18] sm:$0xf0]  ;;  %v1561_v44 = vld [vmem:[#allocation8 + $0xa0] sm:$0xf]  ;;  %v1980_v45 = vld [vmem:[#allocation8 + $0xa4] sm:$0xf0] }
  0x45   :  { %603 = vmatpush.bf16.msrb.mxu0 %v1530_v52  ;;  %v1494_v43 = vor.u32 %v1961_v40, %v1491_v42  ;;  %v1979_v46 = vld [vmem:[#allocation8 + $0xa4] sm:$0xf]  ;;  %v1562_v47 = vor.u32 %v1980_v45, %v1561_v44  ;;  %v1563_v48 = vld [vmem:[#allocation8 + $0xa8] sm:$0xf0]  ;;  %v1481_v50 = vld [vmem:[#allocation8] sm:$0xf] }
  0x46   :  { %616 = vmatpush.bf16.msrb.mxu1 %v1594_v62  ;;  %v1566_v49 = vor.u32 %v1979_v46, %v1563_v48  ;;  %v1960_v51 = vld [vmem:[#allocation8 + $0x4] sm:$0xf0]  ;;  %v1959_v53 = vld [vmem:[#allocation8 + $0x4] sm:$0xf]  ;;  %v1483_v54 = vld [vmem:[#allocation8 + $0x8] sm:$0xf0] }
  0x47   :  { %629 = vmatpush.bf16.msrb.mxu2 %v1534_v57  ;;  %v1482_v52 = vor.u32 %v1960_v51, %v1481_v50  ;;  %v1486_v55 = vor.u32 %v1959_v53, %v1483_v54  ;;  %v1553_v56 = vld [vmem:[#allocation8 + $0x90] sm:$0xf]  ;;  %v1978_v57 = vld [vmem:[#allocation8 + $0x94] sm:$0xf0]  ;;  %v1977_v58 = vld [vmem:[#allocation8 + $0x94] sm:$0xf] }
  0x48   :  { %642 = vmatpush.bf16.msrb.mxu3 %v1598_v0  ;;  %v1554_v59 = vor.u32 %v1978_v57, %v1553_v56  ;;  %v1555_v60 = vld [vmem:[#allocation8 + $0x98] sm:$0xf0]  ;;  %v1545_v62 = vld [vmem:[#allocation8 + $0x80] sm:$0xf]  ;;  %v1975_v0 = vld [vmem:[#allocation8 + $0x84] sm:$0xf] }
  0x49   :  { %604 = vmatpush.bf16.msrb.mxu0 %v1522_v63  ;;  %v1558_v61 = vor.u32 %v1977_v58, %v1555_v60  ;;  %v1976_v63 = vld [vmem:[#allocation8 + $0x84] sm:$0xf0]  ;;  %v1547_v2 = vld [vmem:[#allocation8 + $0x88] sm:$0xf0]  ;;  %v2006_v5 = vld [vmem:[#allocation10 + $0x74] sm:$0xf0] }
  0x4a   :  { %617 = vmatpush.bf16.msrb.mxu1 %v1586_v10  ;;  %v1546_v1 = vor.u32 %v1976_v63, %v1545_v62  ;;  %v1550_v3 = vor.u32 %v1975_v0, %v1547_v2  ;;  %v2005_v6 = vld [vmem:[#allocation10 + $0x74] sm:$0xf]  ;;  %v1667_v8 = vld [vmem:[#allocation10 + $0x78] sm:$0xf0]  ;;  %v1657_v9 = vld [vmem:[#allocation10 + $0x60] sm:$0xf] }
  0x4b   :  { %630 = vmatpush.bf16.msrb.mxu2 %v1526_v4  ;;  %v1665_v4 = vld [vmem:[#allocation10 + $0x70] sm:$0xf]  ;;  %v2004_v10 = vld [vmem:[#allocation10 + $0x64] sm:$0xf0]  ;;  %v1659_v13 = vld [vmem:[#allocation10 + $0x68] sm:$0xf0] }
  0x4c   :  { %643 = vmatpush.bf16.msrb.mxu3 %v1590_v12  ;;  %v1666_v7 = vor.u32 %v2006_v5, %v1665_v4  ;;  %v2003_v12 = vld [vmem:[#allocation10 + $0x64] sm:$0xf]  ;;  %v1729_v14 = vld [vmem:[#allocation10 + $0xf0] sm:$0xf]  ;;  %v1658_v15 = vor.u32 %v2004_v10, %v1657_v9  ;;  %v2021_v17 = vld [vmem:[#allocation10 + $0xf4] sm:$0xf] }
  0x4d   :  { %605 = vmatpush.bf16.msrb.mxu0 %v1514_v11  ;;  %v1670_v11 = vor.u32 %v2005_v6, %v1667_v8  ;;  %v1731_v18 = vld [vmem:[#allocation10 + $0xf8] sm:$0xf0]  ;;  %v1662_v19 = vor.u32 %v2003_v12, %v1659_v13  ;;  %v1721_v26 = vld [vmem:[#allocation10 + $0xe0] sm:$0xf]  ;;  %v2020_v27 = vld [vmem:[#allocation10 + $0xe4] sm:$0xf0] }
  0x4e   :  { %618 = vmatpush.bf16.msrb.mxu1 %v1578_v22  ;;  %v1734_v21 = vor.u32 %v2021_v17, %v1731_v18  ;;  %v1649_v22 = vld [vmem:[#allocation10 + $0x50] sm:$0xf]  ;;  %v1722_v28 = vor.u32 %v2020_v27, %v1721_v26  ;;  %v1723_v30 = vld [vmem:[#allocation10 + $0xe8] sm:$0xf0]  ;;  %v1641_v34 = vld [vmem:[#allocation10 + $0x40] sm:$0xf] }
  0x4f   :  { %631 = vmatpush.bf16.msrb.mxu2 %v1518_v16  ;;  %v2022_v16 = vld [vmem:[#allocation10 + $0xf4] sm:$0xf0]  ;;  %v2017_v39 = vld [vmem:[#allocation10 + $0xd4] sm:$0xf]  ;;  %v1999_v40 = vld [vmem:[#allocation10 + $0x44] sm:$0xf] }
  0x50   :  { %644 = vmatpush.bf16.msrb.mxu3 %v1582_v24  ;;  %v1730_v20 = vor.u32 %v2022_v16, %v1729_v14  ;;  %v2001_v24 = vld [vmem:[#allocation10 + $0x54] sm:$0xf]  ;;  %v2018_v38 = vld [vmem:[#allocation10 + $0xd4] sm:$0xf0]  ;;  %v1715_v42 = vld [vmem:[#allocation10 + $0xd8] sm:$0xf0] }
  0x51   :  { %606 = vmatpush.bf16.msrb.mxu0 %v1506_v23  ;;  %v2002_v23 = vld [vmem:[#allocation10 + $0x54] sm:$0xf0]  ;;  %v1718_v44 = vor.u32 %v2017_v39, %v1715_v42  ;;  %v1997_v5 = vld [vmem:[#allocation10 + $0x34] sm:$0xf]  ;;  %v1705_v9 = vld [vmem:[#allocation10 + $0xc0] sm:$0xf] }
  0x52   :  { %619 = vmatpush.bf16.msrb.mxu1 %v1570_v35  ;;  %v1650_v32 = vor.u32 %v2002_v23, %v1649_v22  ;;  %v2000_v35 = vld [vmem:[#allocation10 + $0x44] sm:$0xf0]  ;;  %v1998_v4 = vld [vmem:[#allocation10 + $0x34] sm:$0xf0]  ;;  %v1707_v13 = vld [vmem:[#allocation10 + $0xc8] sm:$0xf0] }
  0x53   :  { %632 = vmatpush.bf16.msrb.mxu2 %v1510_v25  ;;  %v1651_v25 = vld [vmem:[#allocation10 + $0x58] sm:$0xf0]  ;;  %v1642_v46 = vor.u32 %v2000_v35, %v1641_v34  ;;  %v2016_v10 = vld [vmem:[#allocation10 + $0xc4] sm:$0xf0]  ;;  %v1625_v14 = vld [vmem:[#allocation10 + $0x20] sm:$0xf] }
  0x54   :  { %645 = vmatpush.bf16.msrb.mxu3 %v1574_v37  ;;  %v1654_v36 = vor.u32 %v2001_v24, %v1651_v25  ;;  %v1713_v37 = vld [vmem:[#allocation10 + $0xd0] sm:$0xf]  ;;  %v1706_v12 = vor.u32 %v2016_v10, %v1705_v9  ;;  %v1995_v18 = vld [vmem:[#allocation10 + $0x24] sm:$0xf]  ;;  %v2014_v22 = vld [vmem:[#allocation10 + $0xb4] sm:$0xf0] }
  0x55   :  { %607 = vmatpush.bf16.msrb.mxu0 %v1498_v29  ;;  %v2019_v29 = vld [vmem:[#allocation10 + $0xe4] sm:$0xf]  ;;  %v2013_v23 = vld [vmem:[#allocation10 + $0xb4] sm:$0xf]  ;;  %v1699_v25 = vld [vmem:[#allocation10 + $0xb8] sm:$0xf0] }
  0x56   :  { %620 = vmatpush.bf16.msrb.mxu1 %v1562_v47  ;;  %v1726_v33 = vor.u32 %v2019_v29, %v1723_v30  ;;  %v1702_v26 = vor.u32 %v2013_v23, %v1699_v25  ;;  %v1617_v27 = vld [vmem:[#allocation10 + $0x10] sm:$0xf]  ;;  %v1993_v29 = vld [vmem:[#allocation10 + $0x14] sm:$0xf]  ;;  %v2012_v34 = vld [vmem:[#allocation10 + $0xa4] sm:$0xf0] }
  0x57   :  { %633 = vmatpush.bf16.msrb.mxu2 %v1502_v31  ;;  %v180_v31 = vld [vmem:[#allocation7] sm:$0x3]  ;;  %v1609_v39 = vld [vmem:[#allocation10] sm:$0xf]  ;;  %s1338_s17 = sshll.u32 %s2417_s11, 4  ;;  %s1339_s17 = int_to_ptr.hbm [resolvable:$true] %s1338_s17 }
  0x58   :  { %646 = vmatpush.bf16.msrb.mxu3 %v1566_v49  ;;  %v182_v45 = vperm.slane %v180_v31, 0  ;;  %v1769_v23 = vld [vmem:[#allocation11 + $0x40] sm:$0xf] }
  0x59   :  { %608 = vmatpush.bf16.msrb.mxu0 %v1490_v41  ;;  %v1643_v41 = vld [vmem:[#allocation10 + $0x48] sm:$0xf0] }
  0x5a   :  { %621 = vmatpush.bf16.msrb.mxu1 %v1554_v59  ;;  %v1646_v47 = vor.u32 %v1999_v40, %v1643_v41  ;;  %v1992_v40 = vld [vmem:[#allocation10 + $0x4] sm:$0xf0]  ;;  %v1991_v41 = vld [vmem:[#allocation10 + $0x4] sm:$0xf] }
  0x5b   :  { %634 = vmatpush.bf16.msrb.mxu2 %v1494_v43  ;;  %v1714_v43 = vor.u32 %v2018_v38, %v1713_v37  ;;  %v1691_v37 = vld [vmem:[#allocation10 + $0xa8] sm:$0xf0]  ;;  %v1610_v42 = vor.u32 %v1992_v40, %v1609_v39 }
  0x5c   :  { %647 = vmatpush.bf16.msrb.mxu3 %v1558_v61 }
  0x5d   :  { %609 = vmatpush.bf16.msrb.mxu0 %v1482_v52  ;;  %v183_v52 = vperm.slane %v180_v31, 1  ;;  %v1619_v31 = vld [vmem:[#allocation10 + $0x18] sm:$0xf0] }
  0x5e   :  { %622 = vmatpush.bf16.msrb.mxu1 %v1546_v1 }
  0x5f   :  { %635 = vmatpush.bf16.msrb.mxu2 %v1486_v55 }
  0x60   :  { %648 = vmatpush.bf16.msrb.mxu3 %v1550_v3  ;;  %v1633_v3 = vld [vmem:[#allocation10 + $0x30] sm:$0xf] }
  0x61   :  { %858 = vmatpush.bf16.msra.mxu0 %v1666_v7  ;;  %v1634_v6 = vor.u32 %v1998_v4, %v1633_v3  ;;  %v1635_v7 = vld [vmem:[#allocation10 + $0x38] sm:$0xf0]  ;;  %v1857_v3 = vld [vmem:[#allocation11 + $0xf0] sm:$0xf] }
  0x62   :  { %871 = vmatpush.bf16.msra.mxu1 %v1730_v20  ;;  %v1638_v8 = vor.u32 %v1997_v5, %v1635_v7  ;;  %v2054_v5 = vld [vmem:[#allocation11 + $0xf4] sm:$0xf0]  ;;  %v1859_v7 = vld [vmem:[#allocation11 + $0xf8] sm:$0xf0] }
  0x63   :  { %884 = vmatpush.bf16.msra.mxu2 %v1670_v11  ;;  %v2015_v11 = vld [vmem:[#allocation10 + $0xc4] sm:$0xf]  ;;  %v1858_v9 = vor.u32 %v2054_v5, %v1857_v3  ;;  %v1753_v3 = vld [vmem:[#allocation11 + $0x20] sm:$0xf] }
  0x64   :  { %897 = vmatpush.bf16.msra.mxu3 %v1734_v21  ;;  %v1710_v16 = vor.u32 %v2015_v11, %v1707_v13  ;;  %v1697_v21 = vld [vmem:[#allocation10 + $0xb0] sm:$0xf]  ;;  %v2033_v13 = vld [vmem:[#allocation11 + $0x54] sm:$0xf] }
  0x65   :  { %859 = vmatpush.bf16.msra.mxu0 %v1658_v15  ;;  %v1996_v15 = vld [vmem:[#allocation10 + $0x24] sm:$0xf0]  ;;  %v1698_v24 = vor.u32 %v2014_v22, %v1697_v21  ;;  %v1777_v11 = vld [vmem:[#allocation11 + $0x50] sm:$0xf] }
  0x66   :  { %872 = vmatpush.bf16.msra.mxu1 %v1722_v28  ;;  %v1626_v17 = vor.u32 %v1996_v15, %v1625_v14  ;;  %v1994_v28 = vld [vmem:[#allocation10 + $0x14] sm:$0xf0]  ;;  %v1779_v14 = vld [vmem:[#allocation11 + $0x58] sm:$0xf0]  ;;  %v1849_v15 = vld [vmem:[#allocation11 + $0xe0] sm:$0xf] }
  0x67   :  { %885 = vmatpush.bf16.msra.mxu2 %v1662_v19  ;;  %v1627_v19 = vld [vmem:[#allocation10 + $0x28] sm:$0xf0]  ;;  %v1618_v30 = vor.u32 %v1994_v28, %v1617_v27  ;;  %v1782_v25 = vor.u32 %v2033_v13, %v1779_v14  ;;  %v2050_v27 = vld [vmem:[#allocation11 + $0xd4] sm:$0xf0]  ;;  %v2049_v28 = vld [vmem:[#allocation11 + $0xd4] sm:$0xf] }
  0x68   :  { %898 = vmatpush.bf16.msra.mxu3 %v1726_v33  ;;  %v1630_v20 = vor.u32 %v1995_v18, %v1627_v19  ;;  %v1689_v33 = vld [vmem:[#allocation10 + $0xa0] sm:$0xf]  ;;  %v2051_v18 = vld [vmem:[#allocation11 + $0xe4] sm:$0xf]  ;;  %v1851_v19 = vld [vmem:[#allocation11 + $0xe8] sm:$0xf0] }
  0x69   :  { %860 = vmatpush.bf16.msra.mxu0 %v1650_v32  ;;  %v1622_v32 = vor.u32 %v1993_v29, %v1619_v31  ;;  %v1690_v35 = vor.u32 %v2012_v34, %v1689_v33  ;;  %v1854_v22 = vor.u32 %v2051_v18, %v1851_v19  ;;  %v2031_v29 = vld [vmem:[#allocation11 + $0x44] sm:$0xf]  ;;  %v1843_v31 = vld [vmem:[#allocation11 + $0xd8] sm:$0xf0]  ;;  %v2025_v19 = vld [vmem:[#allocation11 + $0x14] sm:$0xf] }
  0x6a   :  { %873 = vmatpush.bf16.msra.mxu1 %v1714_v43  ;;  %v1611_v43 = vld [vmem:[#allocation10 + $0x8] sm:$0xf0]  ;;  %v1846_v34 = vor.u32 %v2049_v28, %v1843_v31  ;;  %v1827_v14 = vld [vmem:[#allocation11 + $0xb8] sm:$0xf0]  ;;  %v1737_v28 = vld [vmem:[#allocation11] sm:$0xf] }
  0x6b   :  { %886 = vmatpush.bf16.msra.mxu2 %v1654_v36  ;;  %v2011_v36 = vld [vmem:[#allocation10 + $0xa4] sm:$0xf] }
  0x6c   :  { %899 = vmatpush.bf16.msra.mxu3 %v1718_v44  ;;  %v1694_v38 = vor.u32 %v2011_v36, %v1691_v37  ;;  %v1614_v44 = vor.u32 %v1991_v41, %v1611_v43 }
  0x6d   :  { %861 = vmatpush.bf16.msra.mxu0 %v1642_v46  ;;  %v2010_v46 = vld [vmem:[#allocation10 + $0x94] sm:$0xf0] }
  0x6e   :  { %874 = vmatpush.bf16.msra.mxu1 %v1706_v12  ;;  %v2034_v12 = vld [vmem:[#allocation11 + $0x54] sm:$0xf0] }
  0x6f   :  { %887 = vmatpush.bf16.msra.mxu2 %v1646_v47  ;;  %v2009_v47 = vld [vmem:[#allocation10 + $0x94] sm:$0xf]  ;;  %v1778_v21 = vor.u32 %v2034_v12, %v1777_v11  ;;  %v2046_v11 = vld [vmem:[#allocation11 + $0xb4] sm:$0xf0] }
  0x70   :  { %900 = vmatpush.bf16.msra.mxu3 %v1710_v16  ;;  %v2052_v16 = vld [vmem:[#allocation11 + $0xe4] sm:$0xf0]  ;;  %v2045_v12 = vld [vmem:[#allocation11 + $0xb4] sm:$0xf] }
  0x71   :  { %862 = vmatpush.bf16.msra.mxu0 %v1634_v6  ;;  %v2053_v6 = vld [vmem:[#allocation11 + $0xf4] sm:$0xf] }
  0x72   :  { %875 = vmatpush.bf16.msra.mxu1 %v1698_v24  ;;  %v1862_v10 = vor.u32 %v2053_v6, %v1859_v7  ;;  %v2032_v24 = vld [vmem:[#allocation11 + $0x44] sm:$0xf0]  ;;  %v2027_v7 = vld [vmem:[#allocation11 + $0x24] sm:$0xf] }
  0x73   :  { %888 = vmatpush.bf16.msra.mxu2 %v1638_v8 }
  0x74   :  { %901 = vmatpush.bf16.msra.mxu3 %v1702_v26  ;;  %v1841_v26 = vld [vmem:[#allocation11 + $0xd0] sm:$0xf] }
  0x75   :  { %863 = vmatpush.bf16.msra.mxu0 %v1626_v17  ;;  %v1850_v17 = vor.u32 %v2052_v16, %v1849_v15  ;;  %v1842_v33 = vor.u32 %v2050_v27, %v1841_v26  ;;  %v1830_v15 = vor.u32 %v2045_v12, %v1827_v14  ;;  %v1745_v16 = vld [vmem:[#allocation11 + $0x10] sm:$0xf]  ;;  %v1819_v26 = vld [vmem:[#allocation11 + $0xa8] sm:$0xf0] }
  0x76   :  { %876 = vmatpush.bf16.msra.mxu1 %v1690_v35  ;;  %v1770_v35 = vor.u32 %v2032_v24, %v1769_v23  ;;  %v2044_v23 = vld [vmem:[#allocation11 + $0xa4] sm:$0xf0]  ;;  %v2043_v24 = vld [vmem:[#allocation11 + $0xa4] sm:$0xf]  ;;  %v2057_v12 = vld [vmem:[#allocation13 + $0x10] sm:$0xff] }
  0x77   :  { %889 = vmatpush.bf16.msra.mxu2 %v1630_v20  ;;  %v436_v20 = vld [vmem:[%s2410_s4] sm:$0x3]  ;;  %v1822_v27 = vor.u32 %v2043_v24, %v1819_v26 }
  0x78   :  { %902 = vmatpush.bf16.msra.mxu3 %v1694_v38  ;;  %v438_v36 = vperm.slane %v436_v20, 0  ;;  %v2056_v14 = vld [vmem:[#allocation13 + $0x8] sm:$0xff] }
  0x79   :  { %864 = vmatpush.bf16.msra.mxu0 %v1618_v30  ;;  %v1771_v30 = vld [vmem:[#allocation11 + $0x48] sm:$0xf0] }
  0x7a   :  { %v1774_v37 = vor.u32 %v2031_v29, %v1771_v30  ;;  %v2024_v29 = vld [vmem:[#allocation11 + $0x4] sm:$0xf0]  ;;  %v2023_v30 = vld [vmem:[#allocation11 + $0x4] sm:$0xf] }
  0x7b   :  { %890 = vmatpush.bf16.msra.mxu2 %v1622_v32  ;;  %v1738_v31 = vor.u32 %v2024_v29, %v1737_v28 }
  0x7d   :  { %865 = vmatpush.bf16.msra.mxu0 %v1610_v42  ;;  %v439_v42 = vperm.slane %v436_v20, 1  ;;  %v1747_v20 = vld [vmem:[#allocation11 + $0x18] sm:$0xf0] }
  0x7f   :  { %891 = vmatpush.bf16.msra.mxu2 %v1614_v44 }
  0xbd   :  { %v355_v48 = vpop.f32.mrf.mxu0 }
  0xbe   :  { %v356_v49 = vadd.f32 %v355_v48, %v182_v45  ;;  %v368_v50 = vpop.f32.mrf.mxu1  ;;  %v1681_v45 = vld [vmem:[#allocation10 + $0x90] sm:$0xf] }
  0xbf   :  { %v1682_v48 = vor.u32 %v2010_v46, %v1681_v45 }
  0xc0   :  { %v369_v51 = vadd.f32 %v368_v50, %v356_v49  ;;  %v1683_v49 = vld [vmem:[#allocation10 + $0x98] sm:$0xf0] }
  0xc1   :  { %v1686_v50 = vor.u32 %v2009_v47, %v1683_v49  ;;  %877 = vmatpush.bf16.msra.mxu1 %v1682_v48 }
  0xc2   :  { %v398_v53 = vmul.f32 0.2, %v369_v51 }
  0xc3   :  { %903 = vmatpush.bf16.msra.mxu3 %v1686_v50 }
  0xc4   :  { %v400_v54 = vmax.f32 %v369_v51, %v398_v53  ;;  %v1673_v51 = vld [vmem:[#allocation10 + $0x80] sm:$0xf]  ;;  %v2007_v53 = vld [vmem:[#allocation10 + $0x84] sm:$0xf] }
  0xc5   :  { %v381_v55 = vpop.f32.mrf.mxu2  ;;  %v357_v58 = vpop.f32.mrf.mxu0 }
  0xc6   :  { %v382_v56 = vadd.f32 %v381_v55, %v183_v52  ;;  %v394_v57 = vpop.f32.mrf.mxu3  ;;  %v402_v59 = vpack.c.bf16 %v400_v54, %v400_v54  ;;  %v370_v60 = vpop.f32.mrf.mxu1  ;;  %v2008_v52 = vld [vmem:[#allocation10 + $0x84] sm:$0xf0]  ;;  %v1675_v55 = vld [vmem:[#allocation10 + $0x88] sm:$0xf0]  ;;  %v2038_v58 = vld [vmem:[#allocation11 + $0x74] sm:$0xf0] }
  0xc7   :  { %v1674_v54 = vor.u32 %v2008_v52, %v1673_v51 }
  0xc8   :  { %v395_v61 = vadd.f32 %v394_v57, %v382_v56  ;;  %610 = vmatmul.bf16.vlgmr.msrb.gmra.mxu0 %v402_v59  ;;  %636 = vmatmul.bf16.vlgmr.msrb.gmra.mxu2 %v402_v59  ;;  %v1678_v56 = vor.u32 %v2007_v53, %v1675_v55  ;;  %v1793_v57 = vld [vmem:[#allocation11 + $0x70] sm:$0xf]  ;;  %v2037_v59 = vld [vmem:[#allocation11 + $0x74] sm:$0xf] }
  0xc9   :  { %878 = vmatpush.bf16.msra.mxu1 %v1674_v54  ;;  %v1794_v60 = vor.u32 %v2038_v58, %v1793_v57  ;;  %v2030_v57 = vld [vmem:[#allocation11 + $0x34] sm:$0xf0]  ;;  %v2029_v58 = vld [vmem:[#allocation11 + $0x34] sm:$0xf] }
  0xca   :  { %v399_v62 = vmul.f32 0.2, %v395_v61  ;;  %904 = vmatpush.bf16.msra.mxu3 %v1678_v56  ;;  %v1761_v56 = vld [vmem:[#allocation11 + $0x30] sm:$0xf] }
  0xcb   :  { %1114 = vmatpush.bf16.msrb.mxu0 %v1794_v60  ;;  %v1763_v60 = vld [vmem:[#allocation11 + $0x38] sm:$0xf0] }
  0xcc   :  { %v401_v63 = vmax.f32 %v395_v61, %v399_v62  ;;  %v1795_v61 = vld [vmem:[#allocation11 + $0x78] sm:$0xf0]  ;;  %v1785_v62 = vld [vmem:[#allocation11 + $0x60] sm:$0xf] }
  0xcd   :  { %v383_v0 = vpop.f32.mrf.mxu2 }
  0xce   :  { %v403_v1 = vpack.c.bf16 %v401_v63, %v401_v63  ;;  %v396_v2 = vpop.f32.mrf.mxu3  ;;  %v2036_v63 = vld [vmem:[#allocation11 + $0x64] sm:$0xf0]  ;;  %v1798_v0 = vor.u32 %v2037_v59, %v1795_v61  ;;  %v1762_v59 = vor.u32 %v2030_v57, %v1761_v56  ;;  %v1766_v61 = vor.u32 %v2029_v58, %v1763_v60 }
  0xcf   :  { %v1787_v2 = vld [vmem:[#allocation11 + $0x68] sm:$0xf0]  ;;  %v1786_v4 = vor.u32 %v2036_v63, %v1785_v62  ;;  %v1833_v62 = vld [vmem:[#allocation11 + $0xc0] sm:$0xf]  ;;  %v2048_v63 = vld [vmem:[#allocation11 + $0xc4] sm:$0xf0] }
  0xd0   :  { %623 = vmatmul.bf16.vlgmr.msrb.gmra.mxu1 %v403_v1  ;;  %649 = vmatmul.bf16.vlgmr.msrb.gmra.mxu3 %v403_v1  ;;  %v2035_v1 = vld [vmem:[#allocation11 + $0x64] sm:$0xf] }
  0xd1   :  { %1140 = vmatpush.bf16.msrb.mxu2 %v1798_v0  ;;  %v1790_v8 = vor.u32 %v2035_v1, %v1787_v2  ;;  %1127 = vmatpush.bf16.msrb.mxu1 %v1858_v9  ;;  %v2047_v0 = vld [vmem:[#allocation11 + $0xc4] sm:$0xf]  ;;  %v1834_v1 = vor.u32 %v2048_v63, %v1833_v62  ;;  %v1835_v2 = vld [vmem:[#allocation11 + $0xc8] sm:$0xf0] }
  0xd2   :  { %1153 = vmatpush.bf16.msrb.mxu3 %v1862_v10  ;;  %1115 = vmatpush.bf16.msrb.mxu0 %v1786_v4  ;;  %v2028_v4 = vld [vmem:[#allocation11 + $0x24] sm:$0xf0]  ;;  %v1838_v5 = vor.u32 %v2047_v0, %v1835_v2  ;;  %v1825_v10 = vld [vmem:[#allocation11 + $0xb0] sm:$0xf] }
  0xd3   :  { %v1754_v6 = vor.u32 %v2028_v4, %v1753_v3  ;;  %v1826_v13 = vor.u32 %v2046_v11, %v1825_v10  ;;  %v2058_v10 = vld [vmem:[#allocation13 + $0x18] sm:$0xff]  ;;  %v2067_v11 = vld [vmem:[#allocation13 + $0x60] sm:$0xff] }
  0xd5   :  { %1141 = vmatpush.bf16.msrb.mxu2 %v1790_v8  ;;  %1128 = vmatpush.bf16.msrb.mxu1 %v1850_v17  ;;  %v1755_v8 = vld [vmem:[#allocation11 + $0x28] sm:$0xf0]  ;;  %v2026_v17 = vld [vmem:[#allocation11 + $0x14] sm:$0xf0] }
  0xd6   :  { %1154 = vmatpush.bf16.msrb.mxu3 %v1854_v22  ;;  %1116 = vmatpush.bf16.msrb.mxu0 %v1778_v21  ;;  %v1758_v9 = vor.u32 %v2027_v7, %v1755_v8  ;;  %v1746_v18 = vor.u32 %v2026_v17, %v1745_v16  ;;  %v1750_v21 = vor.u32 %v2025_v19, %v1747_v20  ;;  %v1817_v22 = vld [vmem:[#allocation11 + $0xa0] sm:$0xf]  ;;  %v2064_v17 = vld [vmem:[#allocation13 + $0x48] sm:$0xff] }
  0xd7   :  { %v2055_v16 = vld [vmem:[#allocation13] sm:$0xff]  ;;  %v948_v19 = vld [vmem:[%s2414_s8] sm:$0x3] }
  0xd8   :  { %v951_v26 = vperm.slane %v948_v19, 1 }
  0xd9   :  { %1142 = vmatpush.bf16.msrb.mxu2 %v1782_v25  ;;  %1129 = vmatpush.bf16.msrb.mxu1 %v1842_v33  ;;  %v1818_v25 = vor.u32 %v2044_v23, %v1817_v22 }
  0xda   :  { %1155 = vmatpush.bf16.msrb.mxu3 %v1846_v34  ;;  %1117 = vmatpush.bf16.msrb.mxu0 %v1770_v35  ;;  %v1809_v34 = vld [vmem:[#allocation11 + $0x90] sm:$0xf]  ;;  %v2042_v35 = vld [vmem:[#allocation11 + $0x94] sm:$0xf0] }
  0xdd   :  { %1143 = vmatpush.bf16.msrb.mxu2 %v1774_v37  ;;  %1130 = vmatpush.bf16.msrb.mxu1 %v1834_v1  ;;  %v1810_v37 = vor.u32 %v2042_v35, %v1809_v34 }
  0xde   :  { %1118 = vmatpush.bf16.msrb.mxu0 %v1762_v59  ;;  %1156 = vmatpush.bf16.msrb.mxu3 %v1838_v5 }
  0xe1   :  { %1144 = vmatpush.bf16.msrb.mxu2 %v1766_v61  ;;  %1131 = vmatpush.bf16.msrb.mxu1 %v1826_v13  ;;  %v2066_v13 = vld [vmem:[#allocation13 + $0x58] sm:$0xff] }
  0xe2   :  { %1119 = vmatpush.bf16.msrb.mxu0 %v1754_v6  ;;  %1157 = vmatpush.bf16.msrb.mxu3 %v1830_v15  ;;  %v2065_v15 = vld [vmem:[#allocation13 + $0x50] sm:$0xff] }
  0xe5   :  { %1145 = vmatpush.bf16.msrb.mxu2 %v1758_v9  ;;  %1132 = vmatpush.bf16.msrb.mxu1 %v1818_v25 }
  0xe6   :  { %1120 = vmatpush.bf16.msrb.mxu0 %v1746_v18  ;;  %1158 = vmatpush.bf16.msrb.mxu3 %v1822_v27  ;;  %v2063_v18 = vld [vmem:[#allocation13 + $0x40] sm:$0xff] }
  0xe9   :  { %1146 = vmatpush.bf16.msrb.mxu2 %v1750_v21  ;;  %1133 = vmatpush.bf16.msrb.mxu1 %v1810_v37  ;;  %v950_v21 = vperm.slane %v948_v19, 0 }
  0xea   :  { %1121 = vmatpush.bf16.msrb.mxu0 %v1738_v31 }
 0x145   :  { %v611_v32 = vpop.f32.mrf.mxu0 }
 0x146   :  { %v612_v38 = vadd.f32 %v611_v32, %v438_v36  ;;  %v1739_v32 = vld [vmem:[#allocation11 + $0x8] sm:$0xf0]  ;;  %v2041_v36 = vld [vmem:[#allocation11 + $0x94] sm:$0xf] }
 0x147   :  { %v1742_v33 = vor.u32 %v2023_v30, %v1739_v32 }
 0x149   :  { %1147 = vmatpush.bf16.msrb.mxu2 %v1742_v33 }
 0x14b   :  { %v637_v39 = vpop.f32.mrf.mxu2 }
 0x14c   :  { %v638_v46 = vadd.f32 %v637_v39, %v439_v42  ;;  %v2039_v42 = vld [vmem:[#allocation11 + $0x84] sm:$0xf] }
 0x14d   :  { %v624_v40 = vpop.f32.mrf.mxu1  ;;  %v613_v43 = vpop.f32.mrf.mxu0 }
 0x14e   :  { %v625_v41 = vadd.f32 %v624_v40, %v612_v38  ;;  %v1811_v38 = vld [vmem:[#allocation11 + $0x98] sm:$0xf0]  ;;  %v1801_v40 = vld [vmem:[#allocation11 + $0x80] sm:$0xf] }
 0x14f   :  { %v1814_v39 = vor.u32 %v2041_v36, %v1811_v38 }
 0x150   :  { %v654_v44 = vmul.f32 0.2, %v625_v41 }
 0x151   :  { %1159 = vmatpush.bf16.msrb.mxu3 %v1814_v39 }
 0x152   :  { %v656_v45 = vmax.f32 %v625_v41, %v654_v44  ;;  %v2040_v41 = vld [vmem:[#allocation11 + $0x84] sm:$0xf0]  ;;  %v1803_v44 = vld [vmem:[#allocation11 + $0x88] sm:$0xf0] }
 0x153   :  { %v650_v47 = vpop.f32.mrf.mxu3  ;;  %v639_v50 = vpop.f32.mrf.mxu2  ;;  %v1802_v43 = vor.u32 %v2040_v41, %v1801_v40  ;;  %v2083_v41 = vld [vmem:[%s2416_s10] ss:$0 sm:$0xff] }
 0x154   :  { %v658_v48 = vpack.c.bf16 %v656_v45, %v656_v45  ;;  %v651_v49 = vadd.f32 %v650_v47, %v638_v46  ;;  %v1806_v45 = vor.u32 %v2039_v42, %v1803_v44  ;;  %v2062_v46 = vld [vmem:[#allocation13 + $0x38] sm:$0xff]  ;;  %v2060_v50 = vld [vmem:[#allocation13 + $0x28] sm:$0xff] }
 0x155   :  { %v626_v51 = vpop.f32.mrf.mxu1  ;;  %1134 = vmatpush.bf16.msrb.mxu1 %v1802_v43  ;;  %v2070_v47 = vld [vmem:[#allocation13 + $0x78] sm:$0xff] }
 0x156   :  { %v655_v52 = vmul.f32 0.2, %v651_v49  ;;  %866 = vmatmul.bf16.vlgmr.msra.gmra.mxu0 %v658_v48  ;;  %892 = vmatmul.bf16.vlgmr.msra.gmra.mxu2 %v658_v48  ;;  %v2061_v48 = vld [vmem:[#allocation13 + $0x30] sm:$0xff]  ;;  %v2068_v51 = vld [vmem:[#allocation13 + $0x68] sm:$0xff] }
 0x157   :  { %1160 = vmatpush.bf16.msrb.mxu3 %v1806_v45  ;;  %1304 = vmatpush.bf16.msra.mxu0 %v2062_v46 }
 0x158   :  { %v657_v53 = vmax.f32 %v651_v49, %v655_v52  ;;  %v2069_v49 = vld [vmem:[#allocation13 + $0x70] sm:$0xff]  ;;  %v692_v52 = vld [vmem:[%s2412_s6] sm:$0x3] }
 0x159   :  { %v695_v60 = vperm.slane %v692_v52, 1 }
 0x15a   :  { %v659_v54 = vpack.c.bf16 %v657_v53, %v657_v53  ;;  %v2059_v53 = vld [vmem:[#allocation13 + $0x20] sm:$0xff] }
 0x15b   :  { %v652_v55 = vpop.f32.mrf.mxu3  ;;  %1305 = vmatpush.bf16.msra.mxu0 %v2061_v48 }
 0x15c   :  { %879 = vmatmul.bf16.vlgmr.msra.gmra.mxu1 %v659_v54  ;;  %905 = vmatmul.bf16.vlgmr.msra.gmra.mxu3 %v659_v54  ;;  %v694_v55 = vperm.slane %v692_v52, 0 }
 0x15d   :  { %1317 = vmatpush.bf16.msra.mxu1 %v2070_v47 }
 0x15f   :  { %1306 = vmatpush.bf16.msra.mxu0 %v2060_v50 }
 0x161   :  { %1318 = vmatpush.bf16.msra.mxu1 %v2069_v49 }
 0x163   :  { %1307 = vmatpush.bf16.msra.mxu0 %v2059_v53 }
 0x165   :  { %1319 = vmatpush.bf16.msra.mxu1 %v2068_v51 }
 0x167   :  { %1308 = vmatpush.bf16.msra.mxu0 %v2058_v10 }
 0x169   :  { %1320 = vmatpush.bf16.msra.mxu1 %v2067_v11 }
 0x16b   :  { %1309 = vmatpush.bf16.msra.mxu0 %v2057_v12 }
 0x16d   :  { %1321 = vmatpush.bf16.msra.mxu1 %v2066_v13 }
 0x16f   :  { %1310 = vmatpush.bf16.msra.mxu0 %v2056_v14 }
 0x171   :  { %1322 = vmatpush.bf16.msra.mxu1 %v2065_v15 }
 0x173   :  { %1311 = vmatpush.bf16.msra.mxu0 %v2055_v16 }
 0x175   :  { %1323 = vmatpush.bf16.msra.mxu1 %v2064_v17 }
 0x179   :  { %1324 = vmatpush.bf16.msra.mxu1 %v2063_v18 }
 0x1d3   :  { %v867_v54 = vpop.f32.mrf.mxu0 }
 0x1d4   :  { %v868_v56 = vadd.f32 %v867_v54, %v694_v55 }
 0x1d9   :  { %v880_v57 = vpop.f32.mrf.mxu1  ;;  %v893_v58 = vpop.f32.mrf.mxu2 }
 0x1da   :  { %v881_v59 = vadd.f32 %v880_v57, %v868_v56  ;;  %v894_v0 = vadd.f32 %v893_v58, %v695_v60 }
 0x1db   :  { %v869_v61 = vpop.f32.mrf.mxu0 }
 0x1dc   :  { %v910_v62 = vmul.f32 0.2, %v881_v59 }
 0x1de   :  { %v912_v63 = vmax.f32 %v881_v59, %v910_v62 }
 0x1df   :  { %v906_v1 = vpop.f32.mrf.mxu3 }
 0x1e0   :  { %v914_v2 = vpack.c.bf16 %v912_v63, %v912_v63  ;;  %v907_v3 = vadd.f32 %v906_v1, %v894_v0 }
 0x1e1   :  { %v882_v4 = vpop.f32.mrf.mxu1  ;;  %v895_v5 = vpop.f32.mrf.mxu2 }
 0x1e2   :  { %v911_v6 = vmul.f32 0.2, %v907_v3  ;;  %1122 = vmatmul.bf16.vlgmr.msrb.gmra.mxu0 %v914_v2  ;;  %1148 = vmatmul.bf16.vlgmr.msrb.gmra.mxu2 %v914_v2 }
 0x1e4   :  { %v913_v7 = vmax.f32 %v907_v3, %v911_v6 }
 0x1e6   :  { %v915_v8 = vpack.c.bf16 %v913_v7, %v913_v7 }
 0x1e7   :  { %v908_v9 = vpop.f32.mrf.mxu3 }
 0x1e8   :  { %1135 = vmatmul.bf16.vlgmr.msrb.gmra.mxu1 %v915_v8  ;;  %1161 = vmatmul.bf16.vlgmr.msrb.gmra.mxu3 %v915_v8 }
 0x25f   :  { %v1123_v20 = vpop.f32.mrf.mxu0 }
 0x260   :  { %v1124_v22 = vadd.f32 %v1123_v20, %v950_v21 }
 0x265   :  { %v1136_v23 = vpop.f32.mrf.mxu1  ;;  %v1149_v24 = vpop.f32.mrf.mxu2 }
 0x266   :  { %v1137_v25 = vadd.f32 %v1136_v23, %v1124_v22  ;;  %v1150_v30 = vadd.f32 %v1149_v24, %v951_v26 }
 0x267   :  { %v1125_v27 = vpop.f32.mrf.mxu0 }
 0x268   :  { %v1166_v28 = vmul.f32 0.2, %v1137_v25 }
 0x26a   :  { %v1168_v29 = vmax.f32 %v1137_v25, %v1166_v28 }
 0x26b   :  { %v1162_v31 = vpop.f32.mrf.mxu3 }
 0x26c   :  { %v1170_v32 = vpack.c.bf16 %v1168_v29, %v1168_v29  ;;  %v1163_v33 = vadd.f32 %v1162_v31, %v1150_v30 }
 0x26d   :  { %v1138_v34 = vpop.f32.mrf.mxu1  ;;  %v1151_v35 = vpop.f32.mrf.mxu2 }
 0x26e   :  { %v1167_v36 = vmul.f32 0.2, %v1163_v33  ;;  %1312 = vmatmul.bf16.vlgmr.msra.gmra.mxu0 %v1170_v32 }
 0x270   :  { %v1169_v37 = vmax.f32 %v1163_v33, %v1167_v36 }
 0x272   :  { %v1171_v38 = vpack.c.bf16 %v1169_v37, %v1169_v37 }
 0x273   :  { %v1164_v39 = vpop.f32.mrf.mxu3 }
 0x274   :  { %1325 = vmatmul.bf16.vlgmr.msra.gmra.mxu1 %v1171_v38 }
 0x2eb   :  { %v1313_v40 = vpop.f32.mrf.mxu0 }
 0x2ec   :  { %v1314_v42 = vadd.f32 %v2083_v41, %v1313_v40 }
 0x2f1   :  { %v1326_v43 = vpop.f32.mrf.mxu1 }
 0x2f2   :  { %v1327_v44 = vadd.f32 %v1326_v43, %v1314_v42 }
 0x2f3   :  { %v1315_v45 = vpop.f32.mrf.mxu0 }
 0x2f4   :  { %1330 = vst [vmem:[#allocation14] sm:$0xff] %v1327_v44 }
 0x2f5   :  { %1341 = dma.vmem_to_hbm [thread:$0]  %s1337_s15, 128, %s1339_s17, [#allocation4]  }
 0x2f9   :  { %v1328_v46 = vpop.f32.mrf.mxu1 }
 0x2fa   :  { %2284 = dma.done.wait [#allocation4], 128  }
 0x2fb   :  { %2285 = vsyncadd [#allocation4], 4294967168 }
 0x2fc   :  { %1346 = vsyncpa [#allocation3], 1 }
 0x2fd   :  { %1347 = vsyncpa [#allocation6], 1 }
 0x2fe   :  { %1348 = vsyncpa [#allocation9], 1 }
 0x2ff   :  { %1349 = vsyncpa [#allocation12], 1 }
 0x300   :  { %1350 = vsyncpa [#allocation4], 1 }

</bundles_post_ra>
